<compile_context>
chip_gen: v7x
topology: tpu7x:2x2x1
jax: 0.10.0
libtpu: 0.0.40
codegen_flags: <defaults>
</compile_context>

<pallas_src>
import functools
import math

import jax
import jax.numpy as jnp
from jax import lax
from jax.experimental import pallas as pl
from jax.experimental.pallas import tpu as pltpu

LN_EPS = 1e-5


def _round_up(x, m):
    return (x + m - 1) // m * m


@functools.lru_cache(maxsize=1)
def _vmem_capacity_bytes():
    """Physical per-core VMEM; conservative 64 MiB (v7x) fallback."""
    try:
        return int(pltpu.get_tpu_info().vmem_capacity_bytes)
    except Exception:
        return 64 << 20


def _pick_tk(in_p, tk_max):
    """Largest multiple of 128 that divides in_p and is <= tk_max (>=128)."""
    best = 128
    cand = 128
    while cand <= in_p:
        if in_p % cand == 0 and cand <= tk_max:
            best = cand
        cand += 128
    return best


def _pick_tm(M, tm_req):
    """Row tile: multiple of 16 (bf16 sublane packing), shrunk while padding
    would waste more than ~25% of the rows in the padded grid."""
    tm = min(_round_up(tm_req, 16), _round_up(M, 16))
    while tm > 16:
        m_pad = _round_up(M, tm)
        if (m_pad - M) * 4 <= m_pad:
            break
        nxt = max(16, _round_up(tm // 2, 8))
        if nxt >= tm:
            break
        tm = nxt
    return tm


def _ln_prelu(y, gamma, beta, alpha, out_dims):
    """One-pass LayerNorm moments + affine + PReLU on an f32 tile.

    Padded columns of `y` are exactly zero (the weight's padded columns are
    zero), so unmasked sums over the padded width equal sums over the real
    `out_dims` columns; padded output columns stay zero because gamma/beta are
    zero there.
    """
    inv_n = jnp.float32(1.0 / out_dims)
    mean = jnp.sum(y, axis=-1, keepdims=True) * inv_n
    mean_sq = jnp.sum(y * y, axis=-1, keepdims=True) * inv_n
    var = mean_sq - mean * mean
    y_norm = (y - mean) * lax.rsqrt(var + LN_EPS)
    y_norm = y_norm * gamma + beta
    return jnp.where(y_norm >= 0, y_norm, alpha * y_norm)


def _fused_kernel_resident(x_ref, wT_ref, gamma_ref, beta_ref, alpha_ref,
                           o_ref, *, out_dims):
    """Grid = (row tiles,). Whole (padded) weight resident in VMEM; its
    index_map is constant so Pallas revisit-skips the DMA (one HBM fetch)."""
    x = x_ref[...].astype(jnp.bfloat16)          # in-kernel cast (f32 -> bf16)
    y = jnp.dot(x, wT_ref[...], preferred_element_type=jnp.float32)
    out = _ln_prelu(y, gamma_ref[...], beta_ref[...], alpha_ref[0], out_dims)
    # TODO(synk): training-mode dropout (pltpu.prng_seed/prng_random_bits) not
    # implemented; eval-mode nn.Dropout is the identity.
    o_ref[...] = out.astype(o_ref.dtype)


def _fused_kernel_ktiled(x_ref, wT_ref, gamma_ref, beta_ref, alpha_ref,
                         o_ref, acc_ref, *, out_dims):
    """Grid = (row tiles, K tiles) for weights too large to keep resident."""
    k = pl.program_id(1)

    @pl.when(k == 0)
    def _init():
        acc_ref[...] = jnp.zeros_like(acc_ref)

    acc_ref[...] += jnp.dot(x_ref[...].astype(jnp.bfloat16), wT_ref[...],
                            preferred_element_type=jnp.float32)

    @pl.when(k == pl.num_programs(1) - 1)
    def _finalize():
        out = _ln_prelu(acc_ref[...], gamma_ref[...], beta_ref[...],
                        alpha_ref[0], out_dims)
        o_ref[...] = out.astype(o_ref.dtype)


def _fused_layer(x_p, wT_p, gamma_p, beta_p, alpha, *, out_dims, tm, tk,
                 out_dtype):
    """x_p: [M_pad, in_p] (f32 or bf16, lane-dense, zero-padded cols);
    wT_p: [in_p, out_p] bf16. Returns [M_pad, out_p] in out_dtype."""
    M_pad, in_p = x_p.shape
    out_p = wT_p.shape[1]
    assert wT_p.shape[0] == in_p
    assert in_p % 128 == 0 and out_p % 128 == 0 and M_pad % tm == 0

    capacity = _vmem_capacity_bytes()
    budget = (capacity * 3) // 4        # ~48 MiB on v7x, ~96 MiB on v5e/v6e

    # Keep the whole weight resident in VMEM when it is small enough; the
    # constant weight index_map then means W is fetched from HBM exactly once
    # instead of once per row tile (the kernel is HBM-bandwidth bound).
    w_bytes = in_p * out_p * 2
    resident_thresh = (8 << 20) if capacity <= (64 << 20) else (24 << 20)
    weight_resident = w_bytes <= resident_thresh
    if weight_resident:
        tk_eff, nk = in_p, 1
    else:
        tk_eff = _pick_tk(in_p, tk)
        nk = in_p // tk_eff

    x_bytes = x_p.dtype.itemsize
    out_bytes = jnp.dtype(out_dtype).itemsize

    def vmem_need(tm_):
        need = (2 * tm_ * tk_eff * x_bytes       # x tiles (double-buffered)
                + 2 * tk_eff * out_p * 2         # weight buffers (bf16)
                + 2 * tm_ * out_p * out_bytes    # output tiles
                + 2 * 2 * out_p * 4)             # gamma/beta
        if nk > 1:
            need += tm_ * out_p * 4              # f32 accumulator scratch
        return need

    # Graceful degradation for large out_p: shrink the row tile until the
    # working set fits the per-generation VMEM budget.
    while tm > 16 and vmem_need(tm) > budget:
        half = tm // 2
        if half % 8 != 0 or M_pad % half != 0:
            break
        tm = half
    nm = M_pad // tm

    if weight_resident:
        kernel = functools.partial(_fused_kernel_resident, out_dims=out_dims)
        grid = (nm,)
        in_specs = [
            pl.BlockSpec((tm, in_p), lambda i: (i, 0)),
            pl.BlockSpec((in_p, out_p), lambda i: (0, 0)),   # resident weight
            pl.BlockSpec((1, out_p), lambda i: (0, 0)),
            pl.BlockSpec((1, out_p), lambda i: (0, 0)),
            pl.BlockSpec(memory_space=pltpu.MemorySpace.SMEM),
        ]
        out_specs = pl.BlockSpec((tm, out_p), lambda i: (i, 0))
        scratch_shapes = []
        dim_sem = ("parallel",)
    else:
        # TODO(synk): on v5e this K-tiled path would benefit from deeper
        # weight buffering (pipeline_mode=pl.Buffered(3)); left at default.
        kernel = functools.partial(_fused_kernel_ktiled, out_dims=out_dims)
        grid = (nm, nk)
        in_specs = [
            pl.BlockSpec((tm, tk_eff), lambda i, k: (i, k)),
            pl.BlockSpec((tk_eff, out_p), lambda i, k: (k, 0)),
            pl.BlockSpec((1, out_p), lambda i, k: (0, 0)),
            pl.BlockSpec((1, out_p), lambda i, k: (0, 0)),
            pl.BlockSpec(memory_space=pltpu.MemorySpace.SMEM),
        ]
        out_specs = pl.BlockSpec((tm, out_p), lambda i, k: (i, 0))
        scratch_shapes = [pltpu.VMEM((tm, out_p), jnp.float32)]
        dim_sem = ("parallel", "arbitrary")

    flops = 2 * M_pad * in_p * out_p
    bytes_accessed = int(M_pad * in_p * x_bytes
                         + w_bytes * (1 if weight_resident else nm)
                         + 2 * out_p * 4 + 4
                         + M_pad * out_p * out_bytes)
    cost = pl.CostEstimate(flops=int(flops), transcendentals=int(M_pad),
                           bytes_accessed=bytes_accessed)

    # Leave compiler headroom: never ask for the full physical VMEM.
    vmem_limit = int(min(capacity - (8 << 20),
                         max(32 << 20, vmem_need(tm) * 2)))

    return pl.pallas_call(
        kernel,
        out_shape=jax.ShapeDtypeStruct((M_pad, out_p), out_dtype),
        grid_spec=pltpu.PrefetchScalarGridSpec(
            num_scalar_prefetch=0,
            grid=grid,
            in_specs=in_specs,
            out_specs=out_specs,
            scratch_shapes=scratch_shapes,
        ),
        compiler_params=pltpu.CompilerParams(
            dimension_semantics=dim_sem,
            vmem_limit_bytes=vmem_limit,
        ),
        cost_estimate=cost,
    )(x_p, wT_p, gamma_p, beta_p, alpha)


def init_simple_linear_params(key, dims, out_dims=None, n_layers=1):
    """Parameters mirroring Linear(no bias) + LayerNorm + PReLU per layer.

    The Linear weight is pre-transposed, zero-padded to lane-dense (multiples
    of 128) shapes, and cast to bf16 ONCE here, so the forward pass does no
    per-call transpose/pad/cast of the weights.
    """
    out_dims = out_dims or dims
    params = []
    in_d = dims
    for _ in range(n_layers):
        key, wk = jax.random.split(key)
        bound = 1.0 / math.sqrt(in_d)
        w = jax.random.uniform(wk, (out_dims, in_d), jnp.float32, -bound, bound)

        in_p = _round_up(in_d, 128)
        out_p = _round_up(out_dims, 128)
        wT = jnp.zeros((in_p, out_p), jnp.float32).at[:in_d, :out_dims].set(w.T)
        wT = wT.astype(jnp.bfloat16)
        gamma = jnp.zeros((1, out_p), jnp.float32).at[0, :out_dims].set(1.0)
        beta = jnp.zeros((1, out_p), jnp.float32)
        alpha = jnp.full((1,), 0.25, jnp.float32)     # PReLU default slope

        params.append({"w": w, "wT": wT, "gamma": gamma, "beta": beta,
                       "alpha": alpha})
        in_d = out_dims
    return params


@functools.partial(jax.jit, static_argnames=("tm", "tk"))
def simple_linear_forward(x, params, *, tm=None, tk=None):
    """x: [batch, seq, dims] -> [batch, seq, out_dims] (f32)."""
    batch, seq, dims = x.shape
    M = batch * seq
    h = x.reshape(M, dims)                 # stays f32; cast happens in-kernel

    capacity = _vmem_capacity_bytes()
    big_vmem = capacity > (64 << 20)       # v5e / v6e: 128 MiB VMEM
    if tm is None:
        tm = 512 if big_vmem else 256
    if tk is None:
        tk = 1024 if big_vmem else 512

    tm_eff = _pick_tm(M, tm)
    # Prefer >= 2 row tiles so the "parallel" row axis can shard across the
    # two TensorCores of a v7x megacore (cheap: the weight is VMEM-resident).
    if M > 16 and _round_up(M, tm_eff) // tm_eff == 1:
        tm_eff = max(16, _round_up(tm_eff // 2, 8))
    M_pad = _round_up(M, tm_eff)

    # Pad rows + the first layer's input columns once, in f32. Later layers
    # consume the previous layer's already lane-dense bf16 output directly
    # (no per-layer re-pad / re-cast HBM pass).
    in_p0 = params[0]["wT"].shape[0]
    h = jnp.pad(h, ((0, M_pad - M), (0, in_p0 - dims)))

    n_layers = len(params)
    out_dims = dims
    for li, layer in enumerate(params):
        out_dims = layer["w"].shape[0]                # static shapes
        last = li == n_layers - 1
        h = _fused_layer(h, layer["wT"], layer["gamma"], layer["beta"],
                         layer["alpha"], out_dims=out_dims, tm=tm_eff, tk=tk,
                         out_dtype=jnp.float32 if last else jnp.bfloat16)
        # NOTE: padded ROWS of h equal PReLU(beta) after LayerNorm (not zero);
        # rows are independent and sliced off below. Padded COLUMNS stay zero
        # and are also killed by the next layer's zero weight rows.
    return h[:M, :out_dims].reshape(batch, seq, out_dims)


def _reference_forward(x, params, *, matmul_dtype=jnp.float32,
                       cast_intermediate=False):
    """Pure-JAX reference (f32 LN/PReLU; matmul inputs cast to matmul_dtype).
    cast_intermediate mimics the kernel's bf16 inter-layer activations."""
    h = x
    n = len(params)
    for li, layer in enumerate(params):
        w = layer["w"]
        out_d = w.shape[0]
        y = jnp.einsum("bsd,od->bso",
                       h.astype(matmul_dtype), w.astype(matmul_dtype),
                       preferred_element_type=jnp.float32)
        mean = jnp.mean(y, axis=-1, keepdims=True)
        var = jnp.mean((y - mean) ** 2, axis=-1, keepdims=True)
        yn = (y - mean) * lax.rsqrt(var + LN_EPS)
        yn = yn * layer["gamma"][0, :out_d] + layer["beta"][0, :out_d]
        h = jnp.where(yn >= 0, yn, layer["alpha"][0] * yn)
        if cast_intermediate and li < n - 1:
            h = h.astype(jnp.bfloat16).astype(jnp.float32)
    return h


if __name__ == "__main__":
    configs = [
        # (batch, seq, dims, out_dims, n_layers)
        (2, 8, 32, 48, 2),      # sub-128 feature dims -> exercises padding
        (2, 16, 256, 256, 1),   # natively lane-dense path
    ]
    key = jax.random.PRNGKey(0)
    for (batch, seq, dims, out_dims, n_layers) in configs:
        key, xk, pk = jax.random.split(key, 3)
        x = jax.random.normal(xk, (batch, seq, dims), jnp.float32)
        params = init_simple_linear_params(pk, dims, out_dims, n_layers)

        out = simple_linear_forward(x, params)
        jax.block_until_ready(out)
        assert out.shape == (batch, seq, out_dims)

        # Tight check vs. a reference that matches the kernel's precision
        # choices (bf16 matmul inputs, bf16 inter-layer activations).
        ref_bf16 = _reference_forward(x, params, matmul_dtype=jnp.bfloat16,
                                      cast_intermediate=True)
        err_tight = float(jnp.max(jnp.abs(out - ref_bf16)))
        assert err_tight < 3e-2, f"mismatch vs bf16 reference: {err_tight}"

        # Loose sanity check vs. full-f32 reference math.
        ref_f32 = _reference_forward(x, params, matmul_dtype=jnp.float32)
        err_loose = float(jnp.max(jnp.abs(out - ref_f32)))
        assert err_loose < 2.5e-1, f"mismatch vs f32 reference: {err_loose}"

    print("KERNEL_OK")
</pallas_src>

<mosaic_0001>
module attributes {stable_mosaic.version = 11 : i64} {
  func.func @_fused_kernel_resident(%arg0: i32, %arg1: memref<16x128xbf16, #tpu.memory_space<vmem>>, %arg2: memref<128x128xbf16, #tpu.memory_space<vmem>>, %arg3: memref<1x128xf32, #tpu.memory_space<vmem>>, %arg4: memref<1x128xf32, #tpu.memory_space<vmem>>, %arg5: memref<1xf32, #tpu.memory_space<smem>>, %arg6: memref<16x128xf32, #tpu.memory_space<vmem>>) attributes {dimension_semantics = [#tpu.dimension_semantics<parallel>], iteration_bounds = array<i64: 1>, scalar_prefetch = 0 : i64, scratch_operands = 0 : i64, tpu.core_type = #tpu.core_type<tc>, window_params = [{transform_indices = @transform_0, window_bounds = array<i64: 16, 128>}, {pipeline_mode = #tpu.pipeline_mode<synchronous>, transform_indices = @transform_1, window_bounds = array<i64: 128, 128>}, {pipeline_mode = #tpu.pipeline_mode<synchronous>, transform_indices = @transform_2, window_bounds = array<i64: 1, 128>}, {pipeline_mode = #tpu.pipeline_mode<synchronous>, transform_indices = @transform_3, window_bounds = array<i64: 1, 128>}, {transform_indices = @transform_4, window_bounds = array<i64: 1>}, {transform_indices = @transform_5, window_bounds = array<i64: 16, 128>}]} {
    %c0 = arith.constant 0 : index
    %c0_0 = arith.constant 0 : index
    %0 = vector.load %arg1[%c0, %c0_0] : memref<16x128xbf16, #tpu.memory_space<vmem>>, vector<16x128xbf16>
    %c0_1 = arith.constant 0 : index
    %c0_2 = arith.constant 0 : index
    %1 = vector.load %arg2[%c0_1, %c0_2] : memref<128x128xbf16, #tpu.memory_space<vmem>>, vector<128x128xbf16>
    %cst = arith.constant dense<0.000000e+00> : vector<16x128xf32>
    %2 = tpu.matmul %0, %1, %cst {dimension_numbers = #tpu.dot_dimension_numbers<[1], [0], [0], [1], [0, 0, 1, 1], [], []>} : vector<16x128xbf16>, vector<128x128xbf16>, vector<16x128xf32> -> vector<16x128xf32>
    %c0_3 = arith.constant 0 : index
    %c0_4 = arith.constant 0 : index
    %3 = vector.load %arg3[%c0_3, %c0_4] : memref<1x128xf32, #tpu.memory_space<vmem>>, vector<1x128xf32>
    %c0_5 = arith.constant 0 : index
    %c0_6 = arith.constant 0 : index
    %4 = vector.load %arg4[%c0_5, %c0_6] : memref<1x128xf32, #tpu.memory_space<vmem>>, vector<1x128xf32>
    %c0_7 = arith.constant 0 : index
    %5 = memref.load %arg5[%c0_7] : memref<1xf32, #tpu.memory_space<smem>>
    %cst_8 = arith.constant dense<0.000000e+00> : vector<16xf32>
    %6 = vector.multi_reduction <add>, %2, %cst_8 [1] : vector<16x128xf32> to vector<16xf32>
    %7 = vector.shape_cast %6 : vector<16xf32> to vector<16x1xf32>
    %cst_9 = arith.constant 0.020833334 : f32
    %8 = vector.broadcast %cst_9 : f32 to vector<16x1xf32>
    %9 = arith.mulf %7, %8 : vector<16x1xf32>
    %10 = arith.mulf %2, %2 : vector<16x128xf32>
    %cst_10 = arith.constant dense<0.000000e+00> : vector<16xf32>
    %11 = vector.multi_reduction <add>, %10, %cst_10 [1] : vector<16x128xf32> to vector<16xf32>
    %12 = vector.shape_cast %11 : vector<16xf32> to vector<16x1xf32>
    %cst_11 = arith.constant 0.020833334 : f32
    %13 = vector.broadcast %cst_11 : f32 to vector<16x1xf32>
    %14 = arith.mulf %12, %13 : vector<16x1xf32>
    %15 = arith.mulf %9, %9 : vector<16x1xf32>
    %16 = arith.subf %14, %15 : vector<16x1xf32>
    %17 = vector.broadcast %9 : vector<16x1xf32> to vector<16x128xf32>
    %18 = arith.subf %2, %17 : vector<16x128xf32>
    %cst_12 = arith.constant 9.99999974E-6 : f32
    %19 = vector.broadcast %cst_12 : f32 to vector<16x1xf32>
    %20 = arith.addf %16, %19 : vector<16x1xf32>
    %21 = math.rsqrt %20 : vector<16x1xf32>
    %22 = vector.broadcast %21 : vector<16x1xf32> to vector<16x128xf32>
    %23 = arith.mulf %18, %22 : vector<16x128xf32>
    %24 = vector.broadcast %3 : vector<1x128xf32> to vector<16x128xf32>
    %25 = arith.mulf %23, %24 : vector<16x128xf32>
    %26 = vector.broadcast %4 : vector<1x128xf32> to vector<16x128xf32>
    %27 = arith.addf %25, %26 : vector<16x128xf32>
    %cst_13 = arith.constant 0.000000e+00 : f32
    %28 = vector.broadcast %cst_13 : f32 to vector<16x128xf32>
    %29 = arith.cmpf oge, %27, %28 : vector<16x128xf32>
    %30 = vector.broadcast %5 : f32 to vector<16x128xf32>
    %31 = arith.mulf %30, %27 : vector<16x128xf32>
    %32 = arith.select %29, %27, %31 : vector<16x128xi1>, vector<16x128xf32>
    %c0_14 = arith.constant 0 : index
    %c0_15 = arith.constant 0 : index
    %33 = vector.load %arg6[%c0_14, %c0_15] : memref<16x128xf32, #tpu.memory_space<vmem>>, vector<16x128xf32>
    tpu.vector_store %arg6[%c0_14, %c0_15], %32 {strides = array<i32>} : memref<16x128xf32, #tpu.memory_space<vmem>>, vector<16x128xf32>,
    return
  }
  func.func @transform_0(%arg0: i32) -> (i32, i32) {
    %c0_i32 = arith.constant 0 : i32
    %c0_i32_0 = arith.constant 0 : i32
    return %arg0, %c0_i32 : i32, i32
  }
  func.func @transform_1(%arg0: i32) -> (i32, i32) {
    %c0_i32 = arith.constant 0 : i32
    %c0_i32_0 = arith.constant 0 : i32
    %c0_i32_1 = arith.constant 0 : i32
    return %c0_i32, %c0_i32_0 : i32, i32
  }
  func.func @transform_2(%arg0: i32) -> (i32, i32) {
    %c0_i32 = arith.constant 0 : i32
    %c0_i32_0 = arith.constant 0 : i32
    %c0_i32_1 = arith.constant 0 : i32
    return %c0_i32, %c0_i32_0 : i32, i32
  }
  func.func @transform_3(%arg0: i32) -> (i32, i32) {
    %c0_i32 = arith.constant 0 : i32
    %c0_i32_0 = arith.constant 0 : i32
    %c0_i32_1 = arith.constant 0 : i32
    return %c0_i32, %c0_i32_0 : i32, i32
  }
  func.func @transform_4(%arg0: i32) -> i32 {
    %c0_i32 = arith.constant 0 : i32
    %c0_i32_0 = arith.constant 0 : i32
    return %c0_i32 : i32
  }
  func.func @transform_5(%arg0: i32) -> (i32, i32) {
    %c0_i32 = arith.constant 0 : i32
    %c0_i32_0 = arith.constant 0 : i32
    return %arg0, %c0_i32 : i32, i32
  }
}

module attributes {stable_mosaic.version = 11 : i64} {
  func.func @_fused_kernel_resident(%arg0: i32, %arg1: memref<16x128xf32, #tpu.memory_space<vmem>>, %arg2: memref<128x128xbf16, #tpu.memory_space<vmem>>, %arg3: memref<1x128xf32, #tpu.memory_space<vmem>>, %arg4: memref<1x128xf32, #tpu.memory_space<vmem>>, %arg5: memref<1xf32, #tpu.memory_space<smem>>, %arg6: memref<16x128xbf16, #tpu.memory_space<vmem>>) attributes {dimension_semantics = [#tpu.dimension_semantics<parallel>], iteration_bounds = array<i64: 1>, scalar_prefetch = 0 : i64, scratch_operands = 0 : i64, tpu.core_type = #tpu.core_type<tc>, window_params = [{transform_indices = @transform_0, window_bounds = array<i64: 16, 128>}, {pipeline_mode = #tpu.pipeline_mode<synchronous>, transform_indices = @transform_1, window_bounds = array<i64: 128, 128>}, {pipeline_mode = #tpu.pipeline_mode<synchronous>, transform_indices = @transform_2, window_bounds = array<i64: 1, 128>}, {pipeline_mode = #tpu.pipeline_mode<synchronous>, transform_indices = @transform_3, window_bounds = array<i64: 1, 128>}, {transform_indices = @transform_4, window_bounds = array<i64: 1>}, {transform_indices = @transform_5, window_bounds = array<i64: 16, 128>}]} {
    %c0 = arith.constant 0 : index
    %c0_0 = arith.constant 0 : index
    %0 = vector.load %arg1[%c0, %c0_0] : memref<16x128xf32, #tpu.memory_space<vmem>>, vector<16x128xf32>
    %1 = arith.truncf %0 : vector<16x128xf32> to vector<16x128xbf16>
    %c0_1 = arith.constant 0 : index
    %c0_2 = arith.constant 0 : index
    %2 = vector.load %arg2[%c0_1, %c0_2] : memref<128x128xbf16, #tpu.memory_space<vmem>>, vector<128x128xbf16>
    %cst = arith.constant dense<0.000000e+00> : vector<16x128xf32>
    %3 = tpu.matmul %1, %2, %cst {dimension_numbers = #tpu.dot_dimension_numbers<[1], [0], [0], [1], [0, 0, 1, 1], [], []>} : vector<16x128xbf16>, vector<128x128xbf16>, vector<16x128xf32> -> vector<16x128xf32>
    %c0_3 = arith.constant 0 : index
    %c0_4 = arith.constant 0 : index
    %4 = vector.load %arg3[%c0_3, %c0_4] : memref<1x128xf32, #tpu.memory_space<vmem>>, vector<1x128xf32>
    %c0_5 = arith.constant 0 : index
    %c0_6 = arith.constant 0 : index
    %5 = vector.load %arg4[%c0_5, %c0_6] : memref<1x128xf32, #tpu.memory_space<vmem>>, vector<1x128xf32>
    %c0_7 = arith.constant 0 : index
    %6 = memref.load %arg5[%c0_7] : memref<1xf32, #tpu.memory_space<smem>>
    %cst_8 = arith.constant dense<0.000000e+00> : vector<16xf32>
    %7 = vector.multi_reduction <add>, %3, %cst_8 [1] : vector<16x128xf32> to vector<16xf32>
    %8 = vector.shape_cast %7 : vector<16xf32> to vector<16x1xf32>
    %cst_9 = arith.constant 0.020833334 : f32
    %9 = vector.broadcast %cst_9 : f32 to vector<16x1xf32>
    %10 = arith.mulf %8, %9 : vector<16x1xf32>
    %11 = arith.mulf %3, %3 : vector<16x128xf32>
    %cst_10 = arith.constant dense<0.000000e+00> : vector<16xf32>
    %12 = vector.multi_reduction <add>, %11, %cst_10 [1] : vector<16x128xf32> to vector<16xf32>
    %13 = vector.shape_cast %12 : vector<16xf32> to vector<16x1xf32>
    %cst_11 = arith.constant 0.020833334 : f32
    %14 = vector.broadcast %cst_11 : f32 to vector<16x1xf32>
    %15 = arith.mulf %13, %14 : vector<16x1xf32>
    %16 = arith.mulf %10, %10 : vector<16x1xf32>
    %17 = arith.subf %15, %16 : vector<16x1xf32>
    %18 = vector.broadcast %10 : vector<16x1xf32> to vector<16x128xf32>
    %19 = arith.subf %3, %18 : vector<16x128xf32>
    %cst_12 = arith.constant 9.99999974E-6 : f32
    %20 = vector.broadcast %cst_12 : f32 to vector<16x1xf32>
    %21 = arith.addf %17, %20 : vector<16x1xf32>
    %22 = math.rsqrt %21 : vector<16x1xf32>
    %23 = vector.broadcast %22 : vector<16x1xf32> to vector<16x128xf32>
    %24 = arith.mulf %19, %23 : vector<16x128xf32>
    %25 = vector.broadcast %4 : vector<1x128xf32> to vector<16x128xf32>
    %26 = arith.mulf %24, %25 : vector<16x128xf32>
    %27 = vector.broadcast %5 : vector<1x128xf32> to vector<16x128xf32>
    %28 = arith.addf %26, %27 : vector<16x128xf32>
    %cst_13 = arith.constant 0.000000e+00 : f32
    %29 = vector.broadcast %cst_13 : f32 to vector<16x128xf32>
    %30 = arith.cmpf oge, %28, %29 : vector<16x128xf32>
    %31 = vector.broadcast %6 : f32 to vector<16x128xf32>
    %32 = arith.mulf %31, %28 : vector<16x128xf32>
    %33 = arith.select %30, %28, %32 : vector<16x128xi1>, vector<16x128xf32>
    %34 = arith.truncf %33 : vector<16x128xf32> to vector<16x128xbf16>
    %c0_14 = arith.constant 0 : index
    %c0_15 = arith.constant 0 : index
    %35 = vector.load %arg6[%c0_14, %c0_15] : memref<16x128xbf16, #tpu.memory_space<vmem>>, vector<16x128xbf16>
    tpu.vector_store %arg6[%c0_14, %c0_15], %34 {strides = array<i32>} : memref<16x128xbf16, #tpu.memory_space<vmem>>, vector<16x128xbf16>,
    return
  }
  func.func @transform_0(%arg0: i32) -> (i32, i32) {
    %c0_i32 = arith.constant 0 : i32
    %c0_i32_0 = arith.constant 0 : i32
    return %arg0, %c0_i32 : i32, i32
  }
  func.func @transform_1(%arg0: i32) -> (i32, i32) {
    %c0_i32 = arith.constant 0 : i32
    %c0_i32_0 = arith.constant 0 : i32
    %c0_i32_1 = arith.constant 0 : i32
    return %c0_i32, %c0_i32_0 : i32, i32
  }
  func.func @transform_2(%arg0: i32) -> (i32, i32) {
    %c0_i32 = arith.constant 0 : i32
    %c0_i32_0 = arith.constant 0 : i32
    %c0_i32_1 = arith.constant 0 : i32
    return %c0_i32, %c0_i32_0 : i32, i32
  }
  func.func @transform_3(%arg0: i32) -> (i32, i32) {
    %c0_i32 = arith.constant 0 : i32
    %c0_i32_0 = arith.constant 0 : i32
    %c0_i32_1 = arith.constant 0 : i32
    return %c0_i32, %c0_i32_0 : i32, i32
  }
  func.func @transform_4(%arg0: i32) -> i32 {
    %c0_i32 = arith.constant 0 : i32
    %c0_i32_0 = arith.constant 0 : i32
    return %c0_i32 : i32
  }
  func.func @transform_5(%arg0: i32) -> (i32, i32) {
    %c0_i32 = arith.constant 0 : i32
    %c0_i32_0 = arith.constant 0 : i32
    return %arg0, %c0_i32 : i32, i32
  }
}

</mosaic_0001>

<bundles_post_ra>
// kernel: simple_linear_forward.3
= control target key start
LH: loop header
LB: loop body
LE: loop exit
PB: predicated region body
PF: predicated region fallthrough
CT: control target
= control target key end

     0   :  { %v248_v0 = vmov 0.0   ;;  %vm249_vm0 = vmmov 0   ;;  %s322_s1 = inlined_call_operand.vmem [shape: bf16[128,128], index: 1, kind: input, shape index: {}]   ;;  %s323_s0 = inlined_call_operand.vmem [shape: bf16[16,128], index: 0, kind: input, shape index: {}]   ;;  %s324_s2 = inlined_call_operand.vmem [shape: f32[1,128], index: 2, kind: input, shape index: {}]   ;;  %s325_s3 = inlined_call_operand.vmem [shape: f32[1,128], index: 3, kind: input, shape index: {}]   ;;  %s326_s4 = inlined_call_operand.<no memory space> [shape: f32[1], index: 4, kind: input, shape index: {}]   ;;  %s327_s5 = inlined_call_operand.vmem [shape: f32[16,128], index: 5, kind: output, shape index: {}]  }
   0x1   :  { %213 = vmatprep.subr.bf16.mxu0 %v248_v0  ;;  %v235_v1 = vld [vmem:[%s322_s1] sm:$0xff]   ;;  %229 = vmatprep.mubr.msk.bf16.mxu0 %vm249_vm0, %v248_v0  ;;  %v236_v2 = vld [vmem:[%s322_s1 + $0x8] sm:$0xff]   ;;  %v237_v3 = vld [vmem:[%s322_s1 + $0x10] sm:$0xff]   ;;  %v182_v38 = vstv %s326_s4 }
   0x2   :  { %214 = vmatpush3.bf16.msra.mxu0 %v235_v1  ;;  %v238_v4 = vld [vmem:[%s322_s1 + $0x18] sm:$0xff]   ;;  %v239_v5 = vld [vmem:[%s322_s1 + $0x20] sm:$0xff]   ;;  %v240_v6 = vld [vmem:[%s322_s1 + $0x28] sm:$0xff]  }
   0x3   :  { %215 = vmatprep.subr.bf16.mxu0 %v248_v0  ;;  %v241_v7 = vld [vmem:[%s322_s1 + $0x30] sm:$0xff]   ;;  %v242_v8 = vld [vmem:[%s322_s1 + $0x38] sm:$0xff]   ;;  %v243_v9 = vld [vmem:[%s323_s0] sm:$0xff]  }
   0x4   :  { %v202_v32 = vld [vmem:[%s324_s2] ss:$0 sm:$0xff] }
   0x5   :  { %v203_v34 = vld [vmem:[%s325_s3] ss:$0 sm:$0xff] }
   0x6   :  { %216 = vmatpush3.bf16.msra.mxu0 %v236_v2 }
   0x7   :  { %217 = vmatprep.subr.bf16.mxu0 %v248_v0 }
   0xa   :  { %218 = vmatpush3.bf16.msra.mxu0 %v237_v3 }
   0xb   :  { %219 = vmatprep.subr.bf16.mxu0 %v248_v0 }
   0xe   :  { %220 = vmatpush3.bf16.msra.mxu0 %v238_v4 }
   0xf   :  { %221 = vmatprep.subr.bf16.mxu0 %v248_v0 }
  0x12   :  { %222 = vmatpush3.bf16.msra.mxu0 %v239_v5 }
  0x13   :  { %223 = vmatprep.subr.bf16.mxu0 %v248_v0 }
  0x16   :  { %224 = vmatpush3.bf16.msra.mxu0 %v240_v6 }
  0x17   :  { %225 = vmatprep.subr.bf16.mxu0 %v248_v0 }
  0x1a   :  { %226 = vmatpush3.bf16.msra.mxu0 %v241_v7 }
  0x1b   :  { %227 = vmatprep.subr.bf16.mxu0 %v248_v0 }
  0x1e   :  { %228 = vmatpush3.bf16.msra.mxu0 %v242_v8 }
  0x21   :  { %230 = vmatmul.mubr.bf16.vlgmr.msra.gmra.mrb[0].mxu0 %v243_v9 }
  0xf4   :  { %v128_v10 = vpop.f32.mrb[0].mxu0 }
  0xf5   :  { %138 = vadd.xlane.f32.xlu0 %v128_v10  ;;  %v231_v11 = vpop.f32.mrb[1].mxu0  ;;  %v144_v12 = vmul.f32 %v128_v10, %v128_v10 }
  0xf6   :  { %v131_v13 = vpop.f32.mrb[2].mxu0 }
  0xf7   :  { %146 = vadd.xlane.f32.xlu1 %v144_v12  ;;  %v232_v14 = vpop.f32.mrb[3].mxu0  ;;  %v145_v15 = vmul.f32 %v131_v13, %v131_v13 }
  0xf9   :  { %140 = vadd.xlane.f32.xlu0 %v131_v13 }
  0xfb   :  { %148 = vadd.xlane.f32.xlu1 %v145_v15 }
 0x182   :  { %v139_v16 = vpop.xlane.xlu0 %138 }
 0x183   :  { %v142_v17 = vmul.f32 0.020833334, %v139_v16 }
 0x184   :  { %v147_v18 = vpop.xlane.xlu1 %146 }
 0x185   :  { %v152_v19 = vmul.f32 %v142_v17, %v142_v17  ;;  %v150_v20 = vmul.f32 0.020833334, %v147_v18  ;;  %v156_v30 = vsub.f32 %v128_v10, %v142_v17 }
 0x186   :  { %v141_v21 = vpop.xlane.xlu0 %140 }
 0x187   :  { %v154_v22 = vsub.f32 %v150_v20, %v152_v19  ;;  %v143_v23 = vmul.f32 0.020833334, %v141_v21 }
 0x188   :  { %v149_v24 = vpop.xlane.xlu1 %148 }
 0x189   :  { %v158_v25 = vadd.f32 1e-05, %v154_v22  ;;  %v153_v26 = vmul.f32 %v143_v23, %v143_v23  ;;  %v151_v27 = vmul.f32 0.020833334, %v149_v24  ;;  %v157_v36 = vsub.f32 %v131_v13, %v143_v23 }
 0x18b   :  { %244 = vrsqrt.f32 %v158_v25  ;;  %v155_v28 = vsub.f32 %v151_v27, %v153_v26 }
 0x18d   :  { %v159_v29 = vadd.f32 1e-05, %v155_v28 }
 0x18f   :  { %246 = vrsqrt.f32 %v159_v29 }
 0x195   :  { %v245_v31 = vpop.eup %244 }
 0x196   :  { %v162_v33 = vmul.f32 %v245_v31, %v156_v30 }
 0x198   :  { %v170_v35 = vmul.f32 %v202_v32, %v162_v33 }
 0x199   :  { %v247_v37 = vpop.eup %246 }
 0x19a   :  { %v178_v39 = vadd.f32 %v203_v34, %v170_v35  ;;  %v163_v40 = vmul.f32 %v247_v37, %v157_v36 }
 0x19c   :  { %vm180_vm1 = vcmp.ge.f32.partialorder %v178_v39, 0.0  ;;  %v183_v41 = vmul.f32 %v182_v38, %v178_v39  ;;  %v171_v42 = vmul.f32 %v202_v32, %v163_v40 }
 0x19e   :  { %v185_v43 = vsel %vm180_vm1, %v178_v39, %v183_v41  ;;  %v179_v44 = vadd.f32 %v203_v34, %v171_v42 }
 0x19f   :  { %187 = vst [vmem:[%s327_s5] sm:$0xff] %v185_v43 }
 0x1a0   :  { %vm181_vm2 = vcmp.ge.f32.partialorder %v179_v44, 0.0  ;;  %v184_v45 = vmul.f32 %v182_v38, %v179_v44 }
 0x1a2   :  { %v186_v46 = vsel %vm181_vm2, %v179_v44, %v184_v45 }
 0x1a3   :  { %188 = vst [vmem:[%s327_s5 + $0x8] sm:$0xff] %v186_v46 }

// kernel: simple_linear_forward.2
= control target key start
LH: loop header
LB: loop body
LE: loop exit
PB: predicated region body
PF: predicated region fallthrough
CT: control target
= control target key end

     0   :  { %11 = vsyncpa [#allocation4], 0  ;;  %s300_s18 = smov [#allocation3]   ;;  %s365_s0 = inlined_call_operand.vmem [shape: f32[16,128], index: 0, kind: input, shape index: {}]   ;;  %s366_s1 = inlined_call_operand.hbm [shape: bf16[128,128], index: 1, kind: input, shape index: {}]   ;;  %s367_s2 = inlined_call_operand.vmem [shape: f32[1,128], index: 2, kind: input, shape index: {}]   ;;  %s368_s3 = inlined_call_operand.vmem [shape: f32[1,128], index: 3, kind: input, shape index: {}]   ;;  %s369_s4 = inlined_call_operand.<no memory space> [shape: f32[1], index: 4, kind: input, shape index: {}]   ;;  %s370_s5 = inlined_call_operand.vmem [shape: bf16[16,128], index: 5, kind: output, shape index: {}]  }
   0x1   :  { %s19_s19 = sshll.u32 %s300_s18, 4  ;;  %s276_s22 = scalar_lea.hbm %s366_s1, 1024  ;;  %s20_s19 = int_to_ptr.vmem [resolvable:$true] %s19_s19 }
   0x2   :  { %p277_p0 = scmp.ne.s32.totalorder %s366_s1, %s276_s22  ;;  %p280_p1 = scmp.lt.u32.totalorder %s276_s22, %s366_s1 }
   0x4   :  { %p282_p2 = pnand %p280_p1, %p277_p0 }
   0x6   :  { %285 = shalt.err (!%p282_p2)
}
   0x7   :  { %s286_s27 = scalar_lea.vmem %s20_s19, 1024  ;;  %p291_p4 = scmp.lt.s32.totalorder %s20_s19, %s20_s19 }
   0x8   :  { %p287_p3 = scmp.ne.s32.totalorder %s20_s19, %s286_s27  ;;  %p292_p5 = scmp.lt.s32.totalorder %s286_s27, %s286_s27 }
   0xa   :  { %p293_p6 = por %p292_p5, %p291_p4 }
   0xc   :  { %p294_p7 = pnand %p293_p6, %p287_p3 }
   0xe   :  { %297 = shalt.err (!%p294_p7)
}
   0xf   :  { %s301_s28 = smov 64   ;;  %s302_s29 = smov 4  }
  0x10   :  { %25 = dma.hbm_to_vmem [thread:$0]  %s366_s1, 1024, %s20_s19, [#allocation4], %s301_s28, %s301_s28, %s302_s29  }
  0x11   :  { %298 = dma.done.wait [#allocation4], 1024  }
  0x12   :  { %299 = vsyncadd [#allocation4], 4294966272  ;;  %v303_v0 = vmov 0.0   ;;  %vm304_vm0 = vmmov 0   ;;  %v264_v1 = vld [vmem:[#allocation3] sm:$0xff]   ;;  %v265_v2 = vld [vmem:[#allocation3 + $0x8] sm:$0xff]   ;;  %v191_v42 = vstv %s369_s4 }
  0x13   :  { %239 = vmatprep.subr.bf16.mxu0 %v303_v0  ;;  %255 = vmatprep.mubr.msk.bf16.mxu0 %vm304_vm0, %v303_v0  ;;  %v266_v3 = vld [vmem:[#allocation3 + $0x10] sm:$0xff]   ;;  %v267_v4 = vld [vmem:[#allocation3 + $0x18] sm:$0xff]   ;;  %v268_v5 = vld [vmem:[#allocation3 + $0x20] sm:$0xff]  }
  0x14   :  { %240 = vmatpush3.bf16.msra.mxu0 %v264_v1  ;;  %v269_v6 = vld [vmem:[#allocation3 + $0x28] sm:$0xff]   ;;  %v270_v7 = vld [vmem:[#allocation3 + $0x30] sm:$0xff]   ;;  %v271_v8 = vld [vmem:[#allocation3 + $0x38] sm:$0xff]  }
  0x15   :  { %241 = vmatprep.subr.bf16.mxu0 %v303_v0  ;;  %v36_v9 = vld [vmem:[%s365_s0] sm:$0xff]  ;;  %v37_v10 = vld [vmem:[%s365_s0 + $0x8] sm:$0xff] }
  0x16   :  { %v38_v11 = vpack.c.bf16 %v37_v10, %v36_v9  ;;  %v219_v34 = vld [vmem:[%s367_s2] ss:$0 sm:$0xff] }
  0x17   :  { %v220_v36 = vld [vmem:[%s368_s3] ss:$0 sm:$0xff] }
  0x18   :  { %242 = vmatpush3.bf16.msra.mxu0 %v265_v2 }
  0x19   :  { %243 = vmatprep.subr.bf16.mxu0 %v303_v0 }
  0x1c   :  { %244 = vmatpush3.bf16.msra.mxu0 %v266_v3 }
  0x1d   :  { %245 = vmatprep.subr.bf16.mxu0 %v303_v0 }
  0x20   :  { %246 = vmatpush3.bf16.msra.mxu0 %v267_v4 }
  0x21   :  { %247 = vmatprep.subr.bf16.mxu0 %v303_v0 }
  0x24   :  { %248 = vmatpush3.bf16.msra.mxu0 %v268_v5 }
  0x25   :  { %249 = vmatprep.subr.bf16.mxu0 %v303_v0 }
  0x28   :  { %250 = vmatpush3.bf16.msra.mxu0 %v269_v6 }
  0x29   :  { %251 = vmatprep.subr.bf16.mxu0 %v303_v0 }
  0x2c   :  { %252 = vmatpush3.bf16.msra.mxu0 %v270_v7 }
  0x2d   :  { %253 = vmatprep.subr.bf16.mxu0 %v303_v0 }
  0x30   :  { %254 = vmatpush3.bf16.msra.mxu0 %v271_v8 }
  0x33   :  { %256 = vmatmul.mubr.bf16.vlgmr.msra.gmra.mrb[0].mxu0 %v38_v11 }
 0x106   :  { %v137_v12 = vpop.f32.mrb[0].mxu0 }
 0x107   :  { %147 = vadd.xlane.f32.xlu0 %v137_v12  ;;  %v257_v13 = vpop.f32.mrb[1].mxu0  ;;  %v153_v14 = vmul.f32 %v137_v12, %v137_v12 }
 0x108   :  { %v140_v15 = vpop.f32.mrb[2].mxu0 }
 0x109   :  { %155 = vadd.xlane.f32.xlu1 %v153_v14  ;;  %v258_v16 = vpop.f32.mrb[3].mxu0  ;;  %v154_v17 = vmul.f32 %v140_v15, %v140_v15 }
 0x10b   :  { %149 = vadd.xlane.f32.xlu0 %v140_v15 }
 0x10d   :  { %157 = vadd.xlane.f32.xlu1 %v154_v17 }
 0x194   :  { %v148_v18 = vpop.xlane.xlu0 %147 }
 0x195   :  { %v151_v19 = vmul.f32 0.020833334, %v148_v18 }
 0x196   :  { %v156_v20 = vpop.xlane.xlu1 %155 }
 0x197   :  { %v161_v21 = vmul.f32 %v151_v19, %v151_v19  ;;  %v159_v22 = vmul.f32 0.020833334, %v156_v20  ;;  %v165_v32 = vsub.f32 %v137_v12, %v151_v19 }
 0x198   :  { %v150_v23 = vpop.xlane.xlu0 %149 }
 0x199   :  { %v163_v24 = vsub.f32 %v159_v22, %v161_v21  ;;  %v152_v25 = vmul.f32 0.020833334, %v150_v23 }
 0x19a   :  { %v158_v26 = vpop.xlane.xlu1 %157 }
 0x19b   :  { %v167_v27 = vadd.f32 1e-05, %v163_v24  ;;  %v162_v28 = vmul.f32 %v152_v25, %v152_v25  ;;  %v160_v29 = vmul.f32 0.020833334, %v158_v26  ;;  %v166_v38 = vsub.f32 %v140_v15, %v152_v25 }
 0x19d   :  { %272 = vrsqrt.f32 %v167_v27  ;;  %v164_v30 = vsub.f32 %v160_v29, %v162_v28 }
 0x19f   :  { %v168_v31 = vadd.f32 1e-05, %v164_v30 }
 0x1a1   :  { %274 = vrsqrt.f32 %v168_v31 }
 0x1a7   :  { %v273_v33 = vpop.eup %272 }
 0x1a8   :  { %v171_v35 = vmul.f32 %v273_v33, %v165_v32 }
 0x1aa   :  { %v179_v37 = vmul.f32 %v219_v34, %v171_v35 }
 0x1ab   :  { %v275_v39 = vpop.eup %274 }
 0x1ac   :  { %v187_v40 = vadd.f32 %v220_v36, %v179_v37  ;;  %v172_v41 = vmul.f32 %v275_v39, %v166_v38 }
 0x1ae   :  { %v180_v43 = vmul.f32 %v219_v34, %v172_v41  ;;  %v192_v44 = vmul.f32 %v191_v42, %v187_v40  ;;  %vm189_vm1 = vcmp.ge.f32.partialorder %v187_v40, 0.0 }
 0x1b0   :  { %v188_v45 = vadd.f32 %v220_v36, %v180_v43  ;;  %v194_v47 = vsel %vm189_vm1, %v187_v40, %v192_v44 }
 0x1b2   :  { %vm190_vm2 = vcmp.ge.f32.partialorder %v188_v45, 0.0  ;;  %v193_v46 = vmul.f32 %v191_v42, %v188_v45 }
 0x1b4   :  { %v195_v48 = vsel %vm190_vm2, %v188_v45, %v193_v46 }
 0x1b5   :  { %v228_v49 = vpack.c.bf16 %v195_v48, %v194_v47 }
 0x1b7   :  { %229 = vst [vmem:[%s370_s5] sm:$0xff] %v228_v49  }
 0x1b8   :  { %210 = vsyncpa [#allocation4], 1 }

</bundles_post_ra>
